<compile_context>
chip_gen: v7x
topology: tpu7x:2x2x1
jax: 0.10.0
libtpu: 0.0.40
codegen_flags: <defaults>
</compile_context>

<pallas_src>
import functools

import jax
import jax.numpy as jnp
from jax.experimental import pallas as pl
from jax.experimental.pallas import tpu as pltpu

_NEG_PAD = -1e30  # padded-class bias: exp(_NEG_PAD - m) underflows to 0 -> exact log_softmax


# ----------------------------------------------------------------------------
# shared kernel pieces
# ----------------------------------------------------------------------------
def _layer1_order(f_in, hidden):
    # Any RHS width <= 128 lanes costs the same number of MXU column passes, so FLOPs on
    # the N x N contraction are not the criterion.  Pick by cast count / intermediate
    # size: xw_first skips the f32->bf16 recast of an (N, f_in) temp, so prefer it unless
    # `hidden` is much wider than both f_in and one MXU tile.
    return "xw_first" if hidden <= max(f_in, 128) else "ax_first"


def _layer1(a, x, w1, b1, order1):
    """relu(A @ X @ W1 + b1) with bf16 MXU inputs and f32 accumulation."""
    if order1 == "xw_first":
        xw = jnp.dot(x, w1, preferred_element_type=jnp.float32)
        h = jnp.dot(a, xw.astype(jnp.bfloat16), preferred_element_type=jnp.float32)
    else:
        ax = jnp.dot(a, x, preferred_element_type=jnp.float32)
        h = jnp.dot(ax.astype(jnp.bfloat16), w1, preferred_element_type=jnp.float32)
    return jnp.maximum(h + b1, 0.0)


def _log_softmax_rows(z):
    m = jnp.max(z, axis=1, keepdims=True)
    return z - (m + jnp.log(jnp.sum(jnp.exp(z - m), axis=1, keepdims=True)))


# ----------------------------------------------------------------------------
# fused single-call kernel (A fully resident in VMEM, no grid -> no double buffering)
# ----------------------------------------------------------------------------
def _gcn2_fused_kernel(a_ref, x_ref, w1_ref, b1_ref, w2_ref, b2_ref, o_ref, *, order1):
    a = a_ref[...]                                              # (N, N) bf16, resident
    h = _layer1(a, x_ref[...], w1_ref[...], b1_ref[...], order1)
    hw2 = jnp.dot(h.astype(jnp.bfloat16), w2_ref[...],
                  preferred_element_type=jnp.float32)           # (N, Cpad) f32
    z = jnp.dot(a, hw2.astype(jnp.bfloat16),
                preferred_element_type=jnp.float32) + b2_ref[...]
    o_ref[...] = _log_softmax_rows(z).astype(o_ref.dtype)


# ----------------------------------------------------------------------------
# streaming two-pass kernels (A row-tiled through VMEM; scales past the residency cap
# and shards both N^2 contractions across TensorCores via the "parallel" row grid)
# ----------------------------------------------------------------------------
def _stream_pass1_kernel(a_ref, x_ref, w1_ref, b1_ref, w2_ref, hw2_ref, *, order1):
    # The tiny (N,Fin)x(Fin,H) X@W1 is recomputed per row block; its cost is negligible
    # next to the (tm, N) x (N, H) A-row matmul.
    h = _layer1(a_ref[...], x_ref[...], w1_ref[...], b1_ref[...], order1)
    hw2_ref[...] = jnp.dot(h.astype(jnp.bfloat16), w2_ref[...],
                           preferred_element_type=jnp.float32).astype(hw2_ref.dtype)


def _stream_pass2_kernel(a_ref, hw2_ref, b2_ref, o_ref):
    z = jnp.dot(a_ref[...], hw2_ref[...],
                preferred_element_type=jnp.float32) + b2_ref[...]
    o_ref[...] = _log_softmax_rows(z).astype(o_ref.dtype)


# ----------------------------------------------------------------------------
# device / spec helpers
# ----------------------------------------------------------------------------
def _device_kind():
    try:
        return jax.devices()[0].device_kind.lower()
    except Exception:
        return ""


def _vmem_limit_bytes():
    # Physical VMEM: 128 MiB (v5e/v6e), 64 MiB per TensorCore (v7x).  Default scoped
    # limits (16/32/32 MiB) are far smaller, so raise explicitly with headroom.
    return (56 << 20) if "v7" in _device_kind() else (100 << 20)


def _const_spec(shape, single_buffer):
    # Constant index_map => nothing to pipeline; a second buffer is pure VMEM waste.
    ndim = len(shape)
    index_map = lambda i: (0,) * ndim
    if single_buffer:
        return pl.BlockSpec(shape, index_map, pipeline_mode=pl.Buffered(1))
    return pl.BlockSpec(shape, index_map)


def _pick_row_tile(n, target=512):
    """Largest multiple-of-16 divisor of n that is <= target (bf16 sublane packing)."""
    best = None
    for tm in range(16, min(n, target) + 1, 16):
        if n % tm == 0:
            best = tm
    return best if best is not None else n


# ----------------------------------------------------------------------------
# pallas_call wrappers
# ----------------------------------------------------------------------------
def _fused_call(a_bf, x_bf, w1_bf, b1, w2p_bf, b2p, *, order1, vmem_limit):
    n, f_in = x_bf.shape
    hidden = w1_bf.shape[1]
    c_pad = w2p_bf.shape[1]
    flops = 2 * n * (f_in * hidden + n * hidden + hidden * c_pad + n * c_pad)
    bytes_accessed = 2 * n * n + 2 * n * f_in + 4 * n * c_pad
    return pl.pallas_call(
        functools.partial(_gcn2_fused_kernel, order1=order1),
        out_shape=jax.ShapeDtypeStruct((n, c_pad), jnp.float32),
        compiler_params=pltpu.CompilerParams(vmem_limit_bytes=vmem_limit),
        cost_estimate=pl.CostEstimate(flops=flops, transcendentals=n * c_pad,
                                      bytes_accessed=bytes_accessed),
    )(a_bf, x_bf, w1_bf, b1, w2p_bf, b2p)


def _streaming_call(a_bf, x_bf, w1_bf, b1, w2p_bf, b2p, *, order1, single_buffer,
                    vmem_limit, tm):
    n, f_in = x_bf.shape
    hidden = w1_bf.shape[1]
    c_pad = w2p_bf.shape[1]
    grid = (n // tm,)
    cparams = pltpu.CompilerParams(dimension_semantics=("parallel",),
                                   vmem_limit_bytes=vmem_limit)

    # Pass 1: hw2[rows] = relu(A[rows] @ X @ W1 + b1) @ W2   (lane-dense bf16 slab)
    hw2 = pl.pallas_call(
        functools.partial(_stream_pass1_kernel, order1=order1),
        out_shape=jax.ShapeDtypeStruct((n, c_pad), jnp.bfloat16),
        grid=grid,
        in_specs=[
            pl.BlockSpec((tm, n), lambda i: (i, 0)),          # A row block (2-deep pipe)
            _const_spec((n, f_in), single_buffer),            # X (resident)
            _const_spec((f_in, hidden), single_buffer),       # W1
            _const_spec((1, hidden), single_buffer),          # b1
            _const_spec((hidden, c_pad), single_buffer),      # W2 (lane-padded)
        ],
        out_specs=pl.BlockSpec((tm, c_pad), lambda i: (i, 0)),
        compiler_params=cparams,
    )(a_bf, x_bf, w1_bf, b1, w2p_bf)

    # Pass 2: out[rows] = log_softmax(A[rows] @ hw2 + b2)
    return pl.pallas_call(
        _stream_pass2_kernel,
        out_shape=jax.ShapeDtypeStruct((n, c_pad), jnp.float32),
        grid=grid,
        in_specs=[
            pl.BlockSpec((tm, n), lambda i: (i, 0)),          # A row block
            _const_spec((n, c_pad), single_buffer),           # hw2 (resident)
            _const_spec((1, c_pad), single_buffer),           # b2 (lane-padded, -1e30)
        ],
        out_specs=pl.BlockSpec((tm, c_pad), lambda i: (i, 0)),
        compiler_params=cparams,
    )(a_bf, hw2, b2p)


def gcn_forward(x, a_hat, params, *, streaming=None, tm=None):
    """2-layer GCN forward: log_softmax(A_hat @ relu(A_hat @ x @ W1 + b1) @ W2 + b2).

    `a_hat` should be pre-cast to bf16 once per graph (it is static across forwards);
    an f32 a_hat is accepted and cast here as a fallback.
    """
    w1, b1, w2, b2 = params
    n, f_in = x.shape
    hidden = w1.shape[1]
    n_cls = w2.shape[1]
    c_pad = ((n_cls + 127) // 128) * 128                       # lane-dense output slab

    a_bf = a_hat if a_hat.dtype == jnp.bfloat16 else a_hat.astype(jnp.bfloat16)
    x_bf = x.astype(jnp.bfloat16)
    w1_bf = w1.astype(jnp.bfloat16)
    b1_f = jnp.asarray(b1, jnp.float32).reshape(1, hidden)
    w2p_bf = jnp.zeros((hidden, c_pad), jnp.bfloat16).at[:, :n_cls].set(
        w2.astype(jnp.bfloat16))
    b2p = jnp.full((1, c_pad), _NEG_PAD, jnp.float32).at[:, :n_cls].set(
        jnp.asarray(b2, jnp.float32).reshape(1, n_cls))

    order1 = _layer1_order(f_in, hidden)
    vmem_limit = _vmem_limit_bytes()

    if streaming is None:
        # Rough fused-path residency estimate (bf16 operands + f32 output + f32 temps).
        resident = (2 * n * n + 2 * n * f_in + 2 * hidden * (f_in + c_pad)
                    + 4 * n * c_pad + 4 * n * (hidden + c_pad + max(f_in, hidden)))
        streaming = resident > int(0.8 * vmem_limit)

    if streaming:
        if tm is None:
            tm = _pick_row_tile(n)
        try:
            out = _streaming_call(a_bf, x_bf, w1_bf, b1_f, w2p_bf, b2p, order1=order1,
                                  single_buffer=True, vmem_limit=vmem_limit, tm=tm)
        except Exception:
            # This JAX build rejected pl.Buffered(1); use default 2-deep buffering.
            out = _streaming_call(a_bf, x_bf, w1_bf, b1_f, w2p_bf, b2p, order1=order1,
                                  single_buffer=False, vmem_limit=vmem_limit, tm=tm)
    else:
        out = _fused_call(a_bf, x_bf, w1_bf, b1_f, w2p_bf, b2p, order1=order1,
                          vmem_limit=vmem_limit)
    return out[:, :n_cls]


# ----------------------------------------------------------------------------
# plain-JAX glue: dense GCN-normalized adjacency matching PyG gcn_norm
#   - duplicate edges scatter-ADD; existing self-loops dropped; one unit self-loop added
#   - no symmetrization (directed edge list used as-is)
# ----------------------------------------------------------------------------
def normalized_adjacency(edge_index, num_nodes, dtype=jnp.float32):
    src, dst = edge_index[0], edge_index[1]
    w = jnp.where(src != dst, 1.0, 0.0).astype(jnp.float32)
    a = jnp.zeros((num_nodes, num_nodes), jnp.float32).at[dst, src].add(w)
    a = a + jnp.eye(num_nodes, dtype=jnp.float32)
    deg = jnp.sum(a, axis=1)
    d_inv_sqrt = jnp.where(deg > 0, 1.0 / jnp.sqrt(deg), 0.0)
    return (a * d_inv_sqrt[:, None] * d_inv_sqrt[None, :]).astype(dtype)


# ----------------------------------------------------------------------------
# references: exact f32 semantics, and a precision-matched (bf16-input) variant
# ----------------------------------------------------------------------------
def reference_forward_f32(x, a_hat, params):
    w1, b1, w2, b2 = params
    h = jnp.maximum(a_hat @ (x @ w1) + b1, 0.0)
    z = a_hat @ (h @ w2) + b2
    return jax.nn.log_softmax(z, axis=1)


def reference_forward_matched(x, a_hat, params):
    """Same cast points as the kernels (bf16 MXU inputs, f32 accumulation)."""
    w1, b1, w2, b2 = params
    bf = lambda t: t.astype(jnp.bfloat16)
    a = bf(a_hat)
    if _layer1_order(x.shape[1], w1.shape[1]) == "xw_first":
        xw = jnp.dot(bf(x), bf(w1), preferred_element_type=jnp.float32)
        h = jnp.dot(a, bf(xw), preferred_element_type=jnp.float32)
    else:
        ax = jnp.dot(a, bf(x), preferred_element_type=jnp.float32)
        h = jnp.dot(bf(ax), bf(w1), preferred_element_type=jnp.float32)
    h = jnp.maximum(h + b1, 0.0)
    hw2 = jnp.dot(bf(h), bf(w2), preferred_element_type=jnp.float32)
    z = jnp.dot(a, bf(hw2), preferred_element_type=jnp.float32) + b2
    return jax.nn.log_softmax(z, axis=1)


if __name__ == "__main__":
    key = jax.random.PRNGKey(0)

    N = 128            # number of nodes
    F_IN = 16          # dataset.num_node_features
    HIDDEN = 16        # default hidden
    NUM_CLASSES = 8    # dataset.num_classes
    NUM_EDGES = 512

    k_x, k_e1, k_e2, k_w1, k_w2 = jax.random.split(key, 5)

    x = jax.random.normal(k_x, (N, F_IN), jnp.float32)
    src = jax.random.randint(k_e1, (NUM_EDGES,), 0, N)
    dst = jax.random.randint(k_e2, (NUM_EDGES,), 0, N)
    edge_index = jnp.stack([src, dst], axis=0)

    a_hat = normalized_adjacency(edge_index, N)       # f32, for the references
    a_bf = a_hat.astype(jnp.bfloat16)                 # cast ONCE per graph for the kernel

    def glorot(k, shape):
        fan_in, fan_out = shape
        s = jnp.sqrt(6.0 / (fan_in + fan_out))
        return jax.random.uniform(k, shape, jnp.float32, -s, s)

    w1 = glorot(k_w1, (F_IN, HIDDEN))
    b1 = jnp.zeros((1, HIDDEN), jnp.float32)
    w2 = glorot(k_w2, (HIDDEN, NUM_CLASSES))
    b2 = jnp.zeros((1, NUM_CLASSES), jnp.float32)
    params = (w1, b1, w2, b2)

    ref_matched = reference_forward_matched(x, a_hat, params)
    ref_f32 = reference_forward_f32(x, a_hat, params)

    # --- fused single-call path (A resident in VMEM) ---
    out_fused = jax.block_until_ready(gcn_forward(x, a_bf, params, streaming=False))
    assert out_fused.shape == (N, NUM_CLASSES)
    assert jnp.allclose(out_fused, ref_matched, atol=2e-3, rtol=2e-3), \
        "fused: mismatch vs precision-matched reference"
    assert jnp.allclose(out_fused, ref_f32, atol=6e-2, rtol=6e-2), \
        "fused: mismatch vs f32 reference"

    # --- streaming two-pass path (forced here with a small row tile to exercise it) ---
    out_stream = jax.block_until_ready(gcn_forward(x, a_bf, params, streaming=True, tm=64))
    assert out_stream.shape == (N, NUM_CLASSES)
    assert jnp.allclose(out_stream, ref_matched, atol=2e-3, rtol=2e-3), \
        "streaming: mismatch vs precision-matched reference"
    assert jnp.allclose(out_stream, ref_f32, atol=6e-2, rtol=6e-2), \
        "streaming: mismatch vs f32 reference"

    print("KERNEL_OK")
</pallas_src>

<mosaic_0001>
module attributes {stable_mosaic.version = 11 : i64} {
  func.func @_gcn2_fused_kernel(%arg0: memref<128x128xbf16, #tpu.memory_space<vmem>>, %arg1: memref<128x16xbf16, #tpu.memory_space<vmem>>, %arg2: memref<16x16xbf16, #tpu.memory_space<vmem>>, %arg3: memref<1x16xf32, #tpu.memory_space<vmem>>, %arg4: memref<16x128xbf16, #tpu.memory_space<vmem>>, %arg5: memref<1x128xf32, #tpu.memory_space<vmem>>, %arg6: memref<128x128xf32, #tpu.memory_space<vmem>>) attributes {dimension_semantics = [], scalar_prefetch = 0 : i64, scratch_operands = 0 : i64, tpu.core_type = #tpu.core_type<tc>} {
    %c0 = arith.constant 0 : index
    %c0_0 = arith.constant 0 : index
    %0 = vector.load %arg0[%c0, %c0_0] : memref<128x128xbf16, #tpu.memory_space<vmem>>, vector<128x128xbf16>
    %c0_1 = arith.constant 0 : index
    %c0_2 = arith.constant 0 : index
    %1 = vector.load %arg1[%c0_1, %c0_2] : memref<128x16xbf16, #tpu.memory_space<vmem>>, vector<128x16xbf16>
    %c0_3 = arith.constant 0 : index
    %c0_4 = arith.constant 0 : index
    %2 = vector.load %arg2[%c0_3, %c0_4] : memref<16x16xbf16, #tpu.memory_space<vmem>>, vector<16x16xbf16>
    %c0_5 = arith.constant 0 : index
    %c0_6 = arith.constant 0 : index
    %3 = vector.load %arg3[%c0_5, %c0_6] : memref<1x16xf32, #tpu.memory_space<vmem>>, vector<1x16xf32>
    %cst = arith.constant dense<0.000000e+00> : vector<128x16xf32>
    %4 = tpu.matmul %1, %2, %cst {dimension_numbers = #tpu.dot_dimension_numbers<[1], [0], [0], [1], [0, 0, 1, 1], [], []>} : vector<128x16xbf16>, vector<16x16xbf16>, vector<128x16xf32> -> vector<128x16xf32>
    %5 = arith.truncf %4 : vector<128x16xf32> to vector<128x16xbf16>
    %cst_7 = arith.constant dense<0.000000e+00> : vector<128x16xf32>
    %6 = tpu.matmul %0, %5, %cst_7 {dimension_numbers = #tpu.dot_dimension_numbers<[1], [0], [0], [1], [0, 0, 1, 1], [], []>} : vector<128x128xbf16>, vector<128x16xbf16>, vector<128x16xf32> -> vector<128x16xf32>
    %7 = vector.broadcast %3 : vector<1x16xf32> to vector<128x16xf32>
    %8 = arith.addf %6, %7 : vector<128x16xf32>
    %cst_8 = arith.constant 0.000000e+00 : f32
    %9 = vector.broadcast %cst_8 : f32 to vector<128x16xf32>
    %10 = arith.maximumf %8, %9 : vector<128x16xf32>
    %11 = arith.truncf %10 : vector<128x16xf32> to vector<128x16xbf16>
    %c0_9 = arith.constant 0 : index
    %c0_10 = arith.constant 0 : index
    %12 = vector.load %arg4[%c0_9, %c0_10] : memref<16x128xbf16, #tpu.memory_space<vmem>>, vector<16x128xbf16>
    %cst_11 = arith.constant dense<0.000000e+00> : vector<128x128xf32>
    %13 = tpu.matmul %11, %12, %cst_11 {dimension_numbers = #tpu.dot_dimension_numbers<[1], [0], [0], [1], [0, 0, 1, 1], [], []>} : vector<128x16xbf16>, vector<16x128xbf16>, vector<128x128xf32> -> vector<128x128xf32>
    %14 = arith.truncf %13 : vector<128x128xf32> to vector<128x128xbf16>
    %cst_12 = arith.constant dense<0.000000e+00> : vector<128x128xf32>
    %15 = tpu.matmul %0, %14, %cst_12 {dimension_numbers = #tpu.dot_dimension_numbers<[1], [0], [0], [1], [0, 0, 1, 1], [], []>} : vector<128x128xbf16>, vector<128x128xbf16>, vector<128x128xf32> -> vector<128x128xf32>
    %c0_13 = arith.constant 0 : index
    %c0_14 = arith.constant 0 : index
    %16 = vector.load %arg5[%c0_13, %c0_14] : memref<1x128xf32, #tpu.memory_space<vmem>>, vector<1x128xf32>
    %17 = vector.broadcast %16 : vector<1x128xf32> to vector<128x128xf32>
    %18 = arith.addf %15, %17 : vector<128x128xf32>
    %cst_15 = arith.constant dense<0xFF800000> : vector<128xf32>
    %19 = vector.multi_reduction <maximumf>, %18, %cst_15 [1] : vector<128x128xf32> to vector<128xf32>
    %20 = vector.shape_cast %19 : vector<128xf32> to vector<128x1xf32>
    %21 = vector.broadcast %20 : vector<128x1xf32> to vector<128x128xf32>
    %22 = arith.subf %18, %21 : vector<128x128xf32>
    %23 = math.exp %22 : vector<128x128xf32>
    %cst_16 = arith.constant dense<0.000000e+00> : vector<128xf32>
    %24 = vector.multi_reduction <add>, %23, %cst_16 [1] : vector<128x128xf32> to vector<128xf32>
    %25 = vector.shape_cast %24 : vector<128xf32> to vector<128x1xf32>
    %26 = math.log %25 : vector<128x1xf32>
    %27 = arith.addf %20, %26 : vector<128x1xf32>
    %28 = vector.broadcast %27 : vector<128x1xf32> to vector<128x128xf32>
    %29 = arith.subf %18, %28 : vector<128x128xf32>
    %c0_17 = arith.constant 0 : index
    %c0_18 = arith.constant 0 : index
    %30 = vector.load %arg6[%c0_17, %c0_18] : memref<128x128xf32, #tpu.memory_space<vmem>>, vector<128x128xf32>
    tpu.vector_store %arg6[%c0_17, %c0_18], %29 {strides = array<i32>} : memref<128x128xf32, #tpu.memory_space<vmem>>, vector<128x128xf32>,
    return
  }
}

</mosaic_0001>

<bundles_post_ra>
// kernel: tpu_custom_call.1
= control target key start
LH: loop header
LB: loop body
LE: loop exit
PB: predicated region body
PF: predicated region fallthrough
CT: control target
= control target key end

     0   :  { %11 = vsyncpa [#allocation3], 0  ;;  %s1746_s0 = inlined_call_operand.hbm [shape: bf16[128,128], index: 0, kind: input, shape index: {}]   ;;  %s1747_s1 = inlined_call_operand.hbm [shape: bf16[128,16], index: 1, kind: input, shape index: {}]   ;;  %s1748_s2 = inlined_call_operand.hbm [shape: bf16[16,16], index: 2, kind: input, shape index: {}]   ;;  %s1749_s3 = inlined_call_operand.hbm [shape: f32[1,16], index: 3, kind: input, shape index: {}]   ;;  %s1750_s4 = inlined_call_operand.hbm [shape: bf16[16,128], index: 4, kind: input, shape index: {}]   ;;  %s1751_s5 = inlined_call_operand.hbm [shape: f32[1,128], index: 5, kind: input, shape index: {}]   ;;  %s1752_s6 = inlined_call_operand.hbm [shape: f32[128,128], index: 6, kind: output, shape index: {}]  }
   0x1   :  { %12 = vsyncpa [#allocation6], 0 }
   0x2   :  { %13 = vsyncpa [#allocation9], 0 }
   0x3   :  { %14 = vsyncpa [#allocation12], 0 }
   0x4   :  { %15 = vsyncpa [#allocation4], 0  ;;  %s1401_s21 = smov [#allocation5]   ;;  %s1402_s23 = smov [#allocation8]  }
   0x5   :  { %s33_s22 = sshll.u32 %s1401_s21, 4  ;;  %s58_s24 = sshll.u32 %s1402_s23, 4  ;;  %s34_s22 = int_to_ptr.vmem [resolvable:$true] %s33_s22  ;;  %s1447_s24 = int_to_ptr.vmem [resolvable:$true] %s58_s24 }
   0x6   :  { %s1237_s27 = scalar_lea.hbm %s1747_s1, 1024 }
   0x7   :  { %p1238_p0 = scmp.ne.s32.totalorder %s1747_s1, %s1237_s27  ;;  %p1241_p1 = scmp.lt.u32.totalorder %s1237_s27, %s1747_s1 }
   0x9   :  { %p1243_p2 = pnand %p1241_p1, %p1238_p0 }
   0xb   :  { %1246 = shalt.err (!%p1243_p2)
}
   0xc   :  { %s1247_s8 = scalar_lea.vmem %s34_s22, 1024  ;;  %p1252_p4 = scmp.lt.s32.totalorder %s34_s22, %s34_s22 }
   0xd   :  { %p1248_p3 = scmp.ne.s32.totalorder %s34_s22, %s1247_s8  ;;  %p1253_p5 = scmp.lt.s32.totalorder %s1247_s8, %s1247_s8 }
   0xf   :  { %p1254_p6 = por %p1253_p5, %p1252_p4 }
  0x11   :  { %p1255_p7 = pnand %p1254_p6, %p1248_p3 }
  0x13   :  { %1258 = shalt.err (!%p1255_p7)
}
  0x14   :  { %s1403_s9 = smov 64   ;;  %s1404_s10 = smov 4  }
  0x15   :  { %39 = dma.hbm_to_vmem [thread:$0]  %s1747_s1, 1024, %s34_s22, [#allocation6], %s1403_s9, %s1403_s9, %s1404_s10  }
  0x16   :  { %s1259_s15 = scalar_lea.hbm %s1749_s3, 16 }
  0x17   :  { %p1260_p8 = scmp.ne.s32.totalorder %s1749_s3, %s1259_s15  ;;  %p1263_p9 = scmp.lt.u32.totalorder %s1259_s15, %s1749_s3 }
  0x19   :  { %p1265_p10 = pnand %p1263_p9, %p1260_p8 }
  0x1b   :  { %1268 = shalt.err (!%p1265_p10)
}
  0x1c   :  { %s1269_s20 = scalar_lea.vmem %s1447_s24, 16  ;;  %s1273_s1 = scalar_lea.vmem %s1447_s24, 32 }
  0x1d   :  { %p1270_p11 = scmp.ne.s32.totalorder %s1447_s24, %s1269_s20  ;;  %p1274_p12 = scmp.lt.s32.totalorder %s1447_s24, %s1447_s24 }
  0x1e   :  { %p1275_p13 = scmp.lt.s32.totalorder %s1273_s1, %s1269_s20 }
  0x20   :  { %p1276_p0 = por %p1275_p13, %p1274_p12 }
  0x22   :  { %p1277_p1 = pnand %p1276_p0, %p1270_p11 }
  0x24   :  { %1280 = shalt.err (!%p1277_p1)
}
  0x25   :  { %61 = dma.hbm_to_vmem [thread:$0]  %s1749_s3, 16, %s1447_s24, [#allocation9]  }
  0x26   :  { %s1405_s23 = smov [#allocation2]   ;;  %s1406_s26 = smov [#allocation7]  }
  0x27   :  { %s21_s25 = sshll.u32 %s1405_s23, 4  ;;  %s45_s27 = sshll.u32 %s1406_s26, 4  ;;  %s22_s25 = int_to_ptr.vmem [resolvable:$true] %s21_s25  ;;  %s1482_s27 = int_to_ptr.vmem [resolvable:$true] %s45_s27 }
  0x28   :  { %s1281_s30 = scalar_lea.hbm %s1746_s0, 1024 }
  0x29   :  { %p1282_p2 = scmp.ne.s32.totalorder %s1746_s0, %s1281_s30  ;;  %p1285_p3 = scmp.lt.u32.totalorder %s1281_s30, %s1746_s0 }
  0x2b   :  { %p1287_p4 = pnand %p1285_p3, %p1282_p2 }
  0x2d   :  { %1290 = shalt.err (!%p1287_p4)
}
  0x2e   :  { %s1291_s3 = scalar_lea.vmem %s22_s25, 1024  ;;  %p1296_p6 = scmp.lt.s32.totalorder %s22_s25, %s22_s25 }
  0x2f   :  { %p1292_p5 = scmp.ne.s32.totalorder %s22_s25, %s1291_s3  ;;  %p1297_p7 = scmp.lt.s32.totalorder %s1291_s3, %s1291_s3 }
  0x31   :  { %p1298_p8 = por %p1297_p7, %p1296_p6 }
  0x33   :  { %p1299_p9 = pnand %p1298_p8, %p1292_p5 }
  0x35   :  { %1302 = shalt.err (!%p1299_p9)
}
  0x36   :  { %27 = dma.hbm_to_vmem [thread:$0]  %s1746_s0, 1024, %s22_s25, [#allocation3], %s1403_s9, %s1403_s9, %s1404_s10  }
  0x37   :  { %s1303_s16 = scalar_lea.hbm %s1748_s2, 128 }
  0x38   :  { %p1304_p10 = scmp.ne.s32.totalorder %s1748_s2, %s1303_s16  ;;  %p1307_p11 = scmp.lt.u32.totalorder %s1303_s16, %s1748_s2 }
  0x3a   :  { %p1309_p12 = pnand %p1307_p11, %p1304_p10 }
  0x3c   :  { %1312 = shalt.err (!%p1309_p12)
}
  0x3d   :  { %s1313_s1 = scalar_lea.vmem %s1482_s27, 128  ;;  %p1318_p0 = scmp.lt.s32.totalorder %s1482_s27, %s1482_s27 }
  0x3e   :  { %p1314_p13 = scmp.ne.s32.totalorder %s1482_s27, %s1313_s1  ;;  %p1319_p1 = scmp.lt.s32.totalorder %s1313_s1, %s1313_s1 }
  0x40   :  { %p1320_p2 = por %p1319_p1, %p1318_p0 }
  0x42   :  { %p1321_p3 = pnand %p1320_p2, %p1314_p13 }
  0x44   :  { %1324 = shalt.err (!%p1321_p3)
}
  0x45   :  { %51 = dma.hbm_to_vmem [thread:$0]  %s1748_s2, 128, %s1482_s27, [#allocation6], %s1403_s9, %s1403_s9, %s1404_s10  }
  0x46   :  { %s1407_s22 = smov [#allocation10]   ;;  %s1408_s25 = smov [#allocation11]  }
  0x47   :  { %s67_s23 = sshll.u32 %s1407_s22, 4  ;;  %s80_s26 = sshll.u32 %s1408_s25, 4  ;;  %s68_s23 = int_to_ptr.vmem [resolvable:$true] %s67_s23  ;;  %s81_s26 = int_to_ptr.vmem [resolvable:$true] %s80_s26 }
  0x48   :  { %s1325_s30 = scalar_lea.hbm %s1750_s4, 128 }
  0x49   :  { %p1326_p4 = scmp.ne.s32.totalorder %s1750_s4, %s1325_s30  ;;  %p1329_p5 = scmp.lt.u32.totalorder %s1325_s30, %s1750_s4 }
  0x4b   :  { %p1331_p6 = pnand %p1329_p5, %p1326_p4 }
  0x4d   :  { %1334 = shalt.err (!%p1331_p6)
}
  0x4e   :  { %s1335_s2 = scalar_lea.vmem %s68_s23, 128  ;;  %p1340_p8 = scmp.lt.s32.totalorder %s68_s23, %s68_s23 }
  0x4f   :  { %p1336_p7 = scmp.ne.s32.totalorder %s68_s23, %s1335_s2  ;;  %p1341_p9 = scmp.lt.s32.totalorder %s1335_s2, %s1335_s2 }
  0x51   :  { %p1342_p10 = por %p1341_p9, %p1340_p8 }
  0x53   :  { %p1343_p11 = pnand %p1342_p10, %p1336_p7 }
  0x55   :  { %1346 = shalt.err (!%p1343_p11)
}
  0x56   :  { %73 = dma.hbm_to_vmem [thread:$0]  %s1750_s4, 128, %s68_s23, [#allocation9], %s1403_s9, %s1403_s9, %s1404_s10  }
  0x57   :  { %s1347_s14 = scalar_lea.hbm %s1751_s5, 16 }
  0x58   :  { %p1348_p12 = scmp.ne.s32.totalorder %s1751_s5, %s1347_s14  ;;  %p1351_p13 = scmp.lt.u32.totalorder %s1347_s14, %s1751_s5 }
  0x5a   :  { %p1353_p0 = pnand %p1351_p13, %p1348_p12 }
  0x5c   :  { %1356 = shalt.err (!%p1353_p0)
}
  0x5d   :  { %s1357_s19 = scalar_lea.vmem %s81_s26, 16  ;;  %s1361_s20 = scalar_lea.vmem %s81_s26, 32 }
  0x5e   :  { %p1358_p1 = scmp.ne.s32.totalorder %s81_s26, %s1357_s19  ;;  %p1362_p2 = scmp.lt.s32.totalorder %s81_s26, %s81_s26 }
  0x5f   :  { %p1363_p3 = scmp.lt.s32.totalorder %s1361_s20, %s1357_s19 }
  0x61   :  { %p1364_p4 = por %p1363_p3, %p1362_p2 }
  0x63   :  { %p1365_p5 = pnand %p1364_p4, %p1358_p1 }
  0x65   :  { %1368 = shalt.err (!%p1365_p5)
}
  0x66   :  { %83 = dma.hbm_to_vmem [thread:$0]  %s1751_s5, 16, %s81_s26, [#allocation12]  }
  0x67   :  { %1391 = dma.done.wait [#allocation3], 1024  }
  0x68   :  { %1392 = vsyncadd [#allocation3], 4294966272 }
  0x69   :  { %1393 = dma.done.wait [#allocation6], 1152  }
  0x6a   :  { %1394 = vsyncadd [#allocation6], 4294966144 }
  0x6b   :  { %1395 = dma.done.wait [#allocation9], 144  }
  0x6c   :  { %1396 = vsyncadd [#allocation9], 4294967152 }
  0x6d   :  { %1397 = dma.done.wait [#allocation12], 16  }
  0x6e   :  { %1398 = vsyncadd [#allocation12], 4294967280  ;;  %v1155_v0 = vld [vmem:[#allocation7] sm:$0xff]   ;;  %vm184_vm0 = vcmask 130048   ;;  %v1157_v2 = vld [vmem:[#allocation5 + $0x8] sm:$0xff]   ;;  %s1409_s5 = smov [#allocation13]  }
  0x6f   :  { %v1156_v1 = vld [vmem:[#allocation5] sm:$0xff]   ;;  %1028 = vmatprep.subr.bf16.mxu0 %v1155_v0  ;;  %v1158_v3 = vld [vmem:[#allocation5 + $0x10] sm:$0xff]   ;;  %v1159_v4 = vld [vmem:[#allocation5 + $0x18] sm:$0xff]   ;;  %s927_s10 = sshll.u32 %s1409_s5, 4  ;;  %s928_s10 = int_to_ptr.vmem [resolvable:$true] %s927_s10 }
  0x70   :  { %1029 = vmatpush3.bf16.msra.mxu0 %v1155_v0  ;;  %1030 = vmatprep.mubr.msk.bf16.mxu0 %vm184_vm0, %v1156_v1  ;;  %v1160_v5 = vld [vmem:[#allocation5 + $0x20] sm:$0xff]   ;;  %v1161_v6 = vld [vmem:[#allocation5 + $0x28] sm:$0xff]   ;;  %v1162_v7 = vld [vmem:[#allocation5 + $0x30] sm:$0xff]   ;;  %s1369_s1 = scalar_lea.vmem %s928_s10, 2048  ;;  %p1374_p7 = scmp.lt.s32.totalorder %s928_s10, %s928_s10 }
  0x71   :  { %v1163_v8 = vld [vmem:[#allocation5 + $0x38] sm:$0xff]   ;;  %v1554_v9 = vld [vmem:[#allocation2] sm:$0xff]   ;;  %v1172_v10 = vld [vmem:[#allocation10] sm:$0xff]   ;;  %p1370_p6 = scmp.ne.s32.totalorder %s928_s10, %s1369_s1  ;;  %p1375_p8 = scmp.lt.s32.totalorder %s1369_s1, %s1369_s1 }
  0x72   :  { %1062 = vmatprep.mubr.bf16.mxu1 %v1554_v9  ;;  %1078 = vmatprep.subr.bf16.mxu0 %v1172_v10  ;;  %v1557_v35 = vld [vmem:[#allocation2 + $0x8] sm:$0xff]   ;;  %v1166_v36 = vld [vmem:[#allocation2 + $0x10] sm:$0xff]   ;;  %v1560_v37 = vld [vmem:[#allocation2 + $0x18] sm:$0xff]  }
  0x73   :  { %1031 = vmatmul.mubr.msk.bf16.vlgmr.msra.gmra.mrb[0].mxu0 %vm184_vm0, %v1157_v2  ;;  %v1562_v38 = vld [vmem:[#allocation2 + $0x20] sm:$0xff]   ;;  %v1566_v39 = vld [vmem:[#allocation2 + $0x28] sm:$0xff]   ;;  %v1568_v40 = vld [vmem:[#allocation2 + $0x30] sm:$0xff]   ;;  %p1376_p9 = por %p1375_p8, %p1374_p7 }
  0x74   :  { %1034 = vmatprep.mubr.msk.bf16.mxu0 %vm184_vm0, %v1158_v3  ;;  %1079 = vmatpush3.bf16.msra.mxu0 %v1172_v10  ;;  %v1572_v41 = vld [vmem:[#allocation2 + $0x38] sm:$0xff]   ;;  %v959_v42 = vld [vmem:[#allocation8] ss:$0 sm:$0xff] }
  0x75   :  { %p1377_p10 = pnand %p1376_p9, %p1370_p6 }
  0x7b   :  { %1035 = vmatmul.mubr.msk.bf16.gmra.mrb[4].mxu0 %vm184_vm0, %v1159_v4 }
  0x7c   :  { %1038 = vmatprep.mubr.msk.bf16.mxu0 %vm184_vm0, %v1160_v5 }
  0x83   :  { %1039 = vmatmul.mubr.msk.bf16.gmra.mrb[8].mxu0 %vm184_vm0, %v1161_v6 }
  0x84   :  { %1042 = vmatprep.mubr.msk.bf16.mxu0 %vm184_vm0, %v1162_v7 }
  0x8b   :  { %1043 = vmatmul.mubr.msk.bf16.gmra.mrb[12].mxu0 %vm184_vm0, %v1163_v8 }
 0x146   :  { %v1032_v11 = vpop.f32.mrb[0].mxu0 }
 0x147   :  { %v243_v12 = vpop.f32.mrb[1].mxu0 }
 0x148   :  { %v1033_v13 = vpop.f32.mrb[2].mxu0 }
 0x149   :  { %v307_v14 = vpack.c.bf16 %v1033_v13, %v1032_v11  ;;  %v246_v15 = vpop.f32.mrb[3].mxu0 }
 0x14a   :  { %v306_v16 = vpack.c.bf16 %v246_v15, %v243_v12 }
 0x14c   :  { %1046 = vmatprep.subr.bf16.mxu1 %v306_v16 }
 0x14d   :  { %1047 = vmatpush3.bf16.msra.mxu1 %v306_v16 }
 0x14e   :  { %v1036_v17 = vpop.f32.mrb[4].mxu0  ;;  %1048 = vmatprep.subr.bf16.mxu1 %v307_v14 }
 0x14f   :  { %v259_v18 = vpop.f32.mrb[5].mxu0 }
 0x150   :  { %v1037_v19 = vpop.f32.mrb[6].mxu0 }
 0x151   :  { %v309_v20 = vpack.c.bf16 %v1037_v19, %v1036_v17  ;;  %v262_v21 = vpop.f32.mrb[7].mxu0  ;;  %1049 = vmatpush3.bf16.msra.mxu1 %v307_v14 }
 0x152   :  { %v308_v22 = vpack.c.bf16 %v262_v21, %v259_v18 }
 0x154   :  { %1050 = vmatprep.subr.bf16.mxu1 %v308_v22 }
 0x155   :  { %1051 = vmatpush3.bf16.msra.mxu1 %v308_v22 }
 0x156   :  { %v1040_v23 = vpop.f32.mrb[8].mxu0  ;;  %1052 = vmatprep.subr.bf16.mxu1 %v309_v20 }
 0x157   :  { %v275_v24 = vpop.f32.mrb[9].mxu0 }
 0x158   :  { %v1041_v25 = vpop.f32.mrb[10].mxu0 }
 0x159   :  { %v311_v26 = vpack.c.bf16 %v1041_v25, %v1040_v23  ;;  %v278_v27 = vpop.f32.mrb[11].mxu0  ;;  %1053 = vmatpush3.bf16.msra.mxu1 %v309_v20 }
 0x15a   :  { %v310_v28 = vpack.c.bf16 %v278_v27, %v275_v24 }
 0x15c   :  { %1054 = vmatprep.subr.bf16.mxu1 %v310_v28 }
 0x15d   :  { %1055 = vmatpush3.bf16.msra.mxu1 %v310_v28 }
 0x15e   :  { %v1044_v29 = vpop.f32.mrb[12].mxu0  ;;  %1056 = vmatprep.subr.bf16.mxu1 %v311_v26 }
 0x15f   :  { %v291_v30 = vpop.f32.mrb[13].mxu0 }
 0x160   :  { %v1045_v31 = vpop.f32.mrb[14].mxu0 }
 0x161   :  { %v313_v32 = vpack.c.bf16 %v1045_v31, %v1044_v29  ;;  %v294_v33 = vpop.f32.mrb[15].mxu0  ;;  %1057 = vmatpush3.bf16.msra.mxu1 %v311_v26 }
 0x162   :  { %v312_v34 = vpack.c.bf16 %v294_v33, %v291_v30 }
 0x164   :  { %1058 = vmatprep.subr.bf16.mxu1 %v312_v34 }
 0x165   :  { %1059 = vmatpush3.bf16.msra.mxu1 %v312_v34 }
 0x166   :  { %1060 = vmatprep.subr.bf16.mxu1 %v313_v32 }
 0x169   :  { %1061 = vmatpush3.bf16.msra.mxu1 %v313_v32 }
 0x16c   :  { %1063 = vmatmul.mubr.bf16.vlgmr.msra.gmra.mrb[0].mxu1 %v1557_v35 }
 0x16d   :  { %1066 = vmatprep.mubr.bf16.mxu1 %v1166_v36 }
 0x174   :  { %1067 = vmatmul.mubr.bf16.gmra.mrb[4].mxu1 %v1560_v37 }
 0x175   :  { %1070 = vmatprep.mubr.bf16.mxu1 %v1562_v38 }
 0x17c   :  { %1071 = vmatmul.mubr.bf16.gmra.mrb[8].mxu1 %v1566_v39 }
 0x17d   :  { %1074 = vmatprep.mubr.bf16.mxu1 %v1568_v40 }
 0x184   :  { %1075 = vmatmul.mubr.bf16.gmra.mrb[12].mxu1 %v1572_v41 }
 0x185   :  { %1116 = vmatprep.mubr.bf16.mxu1 %v1166_v36 }
 0x23f   :  { %v1064_v43 = vpop.f32.mrb[0].mxu1 }
 0x240   :  { %v411_v44 = vadd.f32 %v1064_v43, %v959_v42  ;;  %v402_v45 = vpop.f32.mrb[1].mxu1 }
 0x241   :  { %v403_v46 = vadd.f32 %v959_v42, %v402_v45  ;;  %v1065_v47 = vpop.f32.mrb[2].mxu1 }
 0x242   :  { %v414_v48 = vadd.f32 %v1065_v47, %v959_v42  ;;  %v405_v49 = vpop.f32.mrb[3].mxu1  ;;  %v467_v51 = vmax.f32 %v411_v44, 0.0 }
 0x243   :  { %v406_v50 = vadd.f32 %v959_v42, %v405_v49  ;;  %v465_v53 = vmax.f32 %v403_v46, 0.0 }
 0x244   :  { %v468_v52 = vmax.f32 %v414_v48, 0.0 }
 0x245   :  { %v466_v54 = vmax.f32 %v406_v50, 0.0 }
 0x246   :  { %v482_v55 = vpack.c.bf16 %v468_v52, %v467_v51 }
 0x247   :  { %v481_v56 = vpack.c.bf16 %v466_v54, %v465_v53  ;;  %v1068_v57 = vpop.f32.mrb[4].mxu1 }
 0x248   :  { %v427_v58 = vadd.f32 %v1068_v57, %v959_v42  ;;  %v418_v59 = vpop.f32.mrb[5].mxu1 }
 0x249   :  { %v419_v60 = vadd.f32 %v959_v42, %v418_v59  ;;  %v1069_v61 = vpop.f32.mrb[6].mxu1  ;;  %1080 = vmatprep.mubr.msk.bf16.mxu0 %vm184_vm0, %v481_v56 }
 0x24a   :  { %v430_v62 = vadd.f32 %v1069_v61, %v959_v42  ;;  %v421_v63 = vpop.f32.mrb[7].mxu1  ;;  %1081 = vmatmul.mubr.msk.bf16.vlgmr.msra.gmra.mrb[16].mxu0 %vm184_vm0, %v482_v55  ;;  %v471_v1 = vmax.f32 %v427_v58, 0.0 }
 0x24b   :  { %v422_v0 = vadd.f32 %v959_v42, %v421_v63  ;;  %v469_v3 = vmax.f32 %v419_v60, 0.0 }
 0x24c   :  { %v472_v2 = vmax.f32 %v430_v62, 0.0 }
 0x24d   :  { %v470_v4 = vmax.f32 %v422_v0, 0.0 }
 0x24e   :  { %v484_v5 = vpack.c.bf16 %v472_v2, %v471_v1  ;;  %v977_v1 = vld [vmem:[#allocation11] ss:$0 sm:$0xff] }
 0x24f   :  { %v483_v6 = vpack.c.bf16 %v470_v4, %v469_v3  ;;  %v1072_v7 = vpop.f32.mrb[8].mxu1 }
 0x250   :  { %v443_v8 = vadd.f32 %v1072_v7, %v959_v42  ;;  %v434_v10 = vpop.f32.mrb[9].mxu1 }
 0x251   :  { %v435_v11 = vadd.f32 %v959_v42, %v434_v10  ;;  %v1073_v12 = vpop.f32.mrb[10].mxu1  ;;  %1084 = vmatprep.mubr.msk.bf16.mxu0 %vm184_vm0, %v483_v6 }
 0x252   :  { %v446_v13 = vadd.f32 %v1073_v12, %v959_v42  ;;  %v437_v14 = vpop.f32.mrb[11].mxu1  ;;  %1085 = vmatmul.mubr.msk.bf16.gmra.mrb[20].mxu0 %vm184_vm0, %v484_v5  ;;  %v475_v16 = vmax.f32 %v443_v8, 0.0 }
 0x253   :  { %v438_v15 = vadd.f32 %v959_v42, %v437_v14  ;;  %v473_v18 = vmax.f32 %v435_v11, 0.0 }
 0x254   :  { %v476_v17 = vmax.f32 %v446_v13, 0.0 }
 0x255   :  { %v474_v19 = vmax.f32 %v438_v15, 0.0 }
 0x256   :  { %v486_v20 = vpack.c.bf16 %v476_v17, %v475_v16 }
 0x257   :  { %v485_v21 = vpack.c.bf16 %v474_v19, %v473_v18  ;;  %v1076_v22 = vpop.f32.mrb[12].mxu1 }
 0x258   :  { %v459_v23 = vadd.f32 %v1076_v22, %v959_v42  ;;  %v450_v24 = vpop.f32.mrb[13].mxu1 }
 0x259   :  { %v451_v25 = vadd.f32 %v959_v42, %v450_v24  ;;  %v1077_v26 = vpop.f32.mrb[14].mxu1  ;;  %1088 = vmatprep.mubr.msk.bf16.mxu0 %vm184_vm0, %v485_v21 }
 0x25a   :  { %v462_v27 = vadd.f32 %v1077_v26, %v959_v42  ;;  %v453_v28 = vpop.f32.mrb[15].mxu1  ;;  %1089 = vmatmul.mubr.msk.bf16.gmra.mrb[24].mxu0 %vm184_vm0, %v486_v20  ;;  %v479_v30 = vmax.f32 %v459_v23, 0.0 }
 0x25b   :  { %v454_v29 = vadd.f32 %v959_v42, %v453_v28  ;;  %v477_v32 = vmax.f32 %v451_v25, 0.0 }
 0x25c   :  { %v480_v31 = vmax.f32 %v462_v27, 0.0 }
 0x25d   :  { %v478_v33 = vmax.f32 %v454_v29, 0.0 }
 0x25e   :  { %v488_v34 = vpack.c.bf16 %v480_v31, %v479_v30 }
 0x25f   :  { %v487_v36 = vpack.c.bf16 %v478_v33, %v477_v32 }
 0x261   :  { %1092 = vmatprep.mubr.msk.bf16.mxu0 %vm184_vm0, %v487_v36 }
 0x262   :  { %1093 = vmatmul.mubr.msk.bf16.gmra.mrb[28].mxu0 %vm184_vm0, %v488_v34 }
 0x263   :  { %1112 = vmatprep.mubr.bf16.mxu0 %v1554_v9 }
 0x31d   :  { %v1082_v43 = vpop.f32.mrb[16].mxu0 }
 0x31e   :  { %v555_v44 = vpop.f32.mrb[17].mxu0 }
 0x31f   :  { %v1083_v45 = vpop.f32.mrb[18].mxu0 }
 0x320   :  { %v619_v46 = vpack.c.bf16 %v1083_v45, %v1082_v43  ;;  %v558_v47 = vpop.f32.mrb[19].mxu0 }
 0x321   :  { %v618_v48 = vpack.c.bf16 %v558_v47, %v555_v44 }
 0x323   :  { %1096 = vmatprep.subr.bf16.mxu0 %v618_v48  ;;  %1128 = vmatprep.subr.bf16.mxu1 %v618_v48 }
 0x324   :  { %1097 = vmatpush3.bf16.msra.mxu0 %v618_v48  ;;  %1136 = vmatpush3.bf16.msra.mxu1 %v618_v48 }
 0x325   :  { %v1086_v42 = vpop.f32.mrb[20].mxu0  ;;  %1098 = vmatprep.subr.bf16.mxu0 %v619_v46  ;;  %1129 = vmatprep.subr.bf16.mxu1 %v619_v46 }
 0x326   :  { %v571_v49 = vpop.f32.mrb[21].mxu0 }
 0x327   :  { %v1087_v50 = vpop.f32.mrb[22].mxu0 }
 0x328   :  { %v621_v51 = vpack.c.bf16 %v1087_v50, %v1086_v42  ;;  %v574_v52 = vpop.f32.mrb[23].mxu0  ;;  %1099 = vmatpush3.bf16.msra.mxu0 %v619_v46  ;;  %1137 = vmatpush3.bf16.msra.mxu1 %v619_v46 }
 0x329   :  { %v620_v9 = vpack.c.bf16 %v574_v52, %v571_v49 }
 0x32b   :  { %1100 = vmatprep.subr.bf16.mxu0 %v620_v9  ;;  %1130 = vmatprep.subr.bf16.mxu1 %v620_v9 }
 0x32c   :  { %1101 = vmatpush3.bf16.msra.mxu0 %v620_v9  ;;  %1138 = vmatpush3.bf16.msra.mxu1 %v620_v9 }
 0x32d   :  { %v1090_v53 = vpop.f32.mrb[24].mxu0  ;;  %1102 = vmatprep.subr.bf16.mxu0 %v621_v51  ;;  %1131 = vmatprep.subr.bf16.mxu1 %v621_v51 }
 0x32e   :  { %v587_v54 = vpop.f32.mrb[25].mxu0 }
 0x32f   :  { %v1091_v55 = vpop.f32.mrb[26].mxu0 }
 0x330   :  { %v623_v56 = vpack.c.bf16 %v1091_v55, %v1090_v53  ;;  %v590_v57 = vpop.f32.mrb[27].mxu0  ;;  %1103 = vmatpush3.bf16.msra.mxu0 %v621_v51  ;;  %1139 = vmatpush3.bf16.msra.mxu1 %v621_v51 }
 0x331   :  { %v622_v58 = vpack.c.bf16 %v590_v57, %v587_v54 }
 0x333   :  { %1104 = vmatprep.subr.bf16.mxu0 %v622_v58  ;;  %1132 = vmatprep.subr.bf16.mxu1 %v622_v58 }
 0x334   :  { %1105 = vmatpush3.bf16.msra.mxu0 %v622_v58  ;;  %1140 = vmatpush3.bf16.msra.mxu1 %v622_v58 }
 0x335   :  { %v1094_v59 = vpop.f32.mrb[28].mxu0  ;;  %1106 = vmatprep.subr.bf16.mxu0 %v623_v56  ;;  %1133 = vmatprep.subr.bf16.mxu1 %v623_v56 }
 0x336   :  { %v603_v60 = vpop.f32.mrb[29].mxu0 }
 0x337   :  { %v1095_v61 = vpop.f32.mrb[30].mxu0 }
 0x338   :  { %v625_v62 = vpack.c.bf16 %v1095_v61, %v1094_v59  ;;  %v606_v63 = vpop.f32.mrb[31].mxu0  ;;  %1107 = vmatpush3.bf16.msra.mxu0 %v623_v56  ;;  %1141 = vmatpush3.bf16.msra.mxu1 %v623_v56 }
 0x339   :  { %v624_v0 = vpack.c.bf16 %v606_v63, %v603_v60 }
 0x33b   :  { %1108 = vmatprep.subr.bf16.mxu0 %v624_v0  ;;  %1134 = vmatprep.subr.bf16.mxu1 %v624_v0 }
 0x33c   :  { %1109 = vmatpush3.bf16.msra.mxu0 %v624_v0  ;;  %1142 = vmatpush3.bf16.msra.mxu1 %v624_v0 }
 0x33d   :  { %1110 = vmatprep.subr.bf16.mxu0 %v625_v62  ;;  %1135 = vmatprep.subr.bf16.mxu1 %v625_v62 }
 0x340   :  { %1111 = vmatpush3.bf16.msra.mxu0 %v625_v62  ;;  %1143 = vmatpush3.bf16.msra.mxu1 %v625_v62 }
 0x343   :  { %1113 = vmatmul.mubr.bf16.vlgmr.msra.gmra.mrb[32].mxu0 %v1557_v35  ;;  %1117 = vmatmul.mubr.bf16.vlgmr.msra.gmra.mrb[16].mxu1 %v1560_v37 }
 0x344   :  { %1120 = vmatprep.mubr.bf16.mxu1 %v1562_v38 }
 0x34b   :  { %1121 = vmatmul.mubr.bf16.gmra.mrb[20].mxu1 %v1566_v39 }
 0x34c   :  { %1124 = vmatprep.mubr.bf16.mxu1 %v1568_v40 }
 0x353   :  { %1125 = vmatmul.mubr.bf16.gmra.mrb[24].mxu1 %v1572_v41 }
 0x416   :  { %v1114_v2 = vpop.f32.mrb[32].mxu0  ;;  %v1118_v3 = vpop.f32.mrb[16].mxu1 }
 0x417   :  { %v1590_v4 = vadd.f32 %v1114_v2, %v977_v1  ;;  %v1592_v5 = vadd.f32 %v1118_v3, %v977_v1  ;;  %v667_v6 = vpop.f32.mrb[33].mxu0  ;;  %v683_v7 = vpop.f32.mrb[17].mxu1 }
 0x418   :  { %v1115_v35 = vpop.f32.mrb[34].mxu0  ;;  %v1119_v8 = vpop.f32.mrb[18].mxu1  ;;  %v1596_v39 = vadd.f32 %v977_v1, %v667_v6  ;;  %v1602_v10 = vadd.f32 %v977_v1, %v683_v7 }
 0x419   :  { %742 = vmax.xlane.f32.xlu0 %v1592_v5  ;;  %v686_v37 = vpop.f32.mrb[19].mxu1  ;;  %734 = vmax.xlane.f32.xlu1 %v1590_v4  ;;  %v670_v38 = vpop.f32.mrb[35].mxu0  ;;  %v1598_v40 = vadd.f32 %v1115_v35, %v977_v1  ;;  %v1604_v11 = vadd.f32 %v1119_v8, %v977_v1 }
 0x41a   :  { %v1608_v15 = vadd.f32 %v977_v1, %v686_v37  ;;  %v1610_v16 = vadd.f32 %v977_v1, %v670_v38 }
 0x41d   :  { %736 = vmax.xlane.f32.xlu1 %v1598_v40  ;;  %730 = vmax.xlane.f32.xlu0 %v1596_v39 }
 0x41e   :  { %v1122_v41 = vpop.f32.mrb[20].mxu1 }
 0x41f   :  { %v699_v12 = vpop.f32.mrb[21].mxu1  ;;  %v1612_v17 = vadd.f32 %v1122_v41, %v977_v1 }
 0x420   :  { %v1123_v13 = vpop.f32.mrb[22].mxu1  ;;  %v1620_v23 = vadd.f32 %v977_v1, %v699_v12 }
 0x421   :  { %744 = vmax.xlane.f32.xlu1 %v1604_v11  ;;  %738 = vmax.xlane.f32.xlu0 %v1602_v10  ;;  %v702_v14 = vpop.f32.mrb[23].mxu1  ;;  %v1616_v18 = vadd.f32 %v1123_v13, %v977_v1 }
 0x422   :  { %v1622_v24 = vadd.f32 %v977_v1, %v702_v14 }
 0x425   :  { %740 = vmax.xlane.f32.xlu1 %v1608_v15  ;;  %732 = vmax.xlane.f32.xlu0 %v1610_v16 }
 0x426   :  { %v1126_v19 = vpop.f32.mrb[24].mxu1 }
 0x427   :  { %v715_v20 = vpop.f32.mrb[25].mxu1  ;;  %v1632_v27 = vadd.f32 %v1126_v19, %v977_v1 }
 0x428   :  { %v1127_v21 = vpop.f32.mrb[26].mxu1  ;;  %v1624_v25 = vadd.f32 %v977_v1, %v715_v20 }
 0x429   :  { %752 = vmax.xlane.f32.xlu1 %v1616_v18  ;;  %750 = vmax.xlane.f32.xlu0 %v1612_v17  ;;  %v718_v22 = vpop.f32.mrb[27].mxu1  ;;  %v1634_v28 = vadd.f32 %v1127_v21, %v977_v1 }
 0x42a   :  { %v1628_v26 = vadd.f32 %v977_v1, %v718_v22 }
 0x42d   :  { %748 = vmax.xlane.f32.xlu1 %v1622_v24  ;;  %746 = vmax.xlane.f32.xlu0 %v1620_v23 }
 0x431   :  { %756 = vmax.xlane.f32.xlu1 %v1628_v26  ;;  %754 = vmax.xlane.f32.xlu0 %v1624_v25 }
 0x435   :  { %760 = vmax.xlane.f32.xlu1 %v1634_v28  ;;  %758 = vmax.xlane.f32.xlu0 %v1632_v27 }
 0x4a6   :  { %v1638_v29 = vpop.xlane.xlu0 %742  ;;  %v1640_v30 = vpop.xlane.xlu1 %734 }
 0x4a7   :  { %v764_v31 = vsub.f32 %v1590_v4, %v1640_v30  ;;  %v768_v32 = vsub.f32 %v1592_v5, %v1638_v29 }
 0x4a9   :  { %v782_v33 = vmul.f32 1.442695, %v764_v31  ;;  %v790_v44 = vmul.f32 1.442695, %v768_v32 }
 0x4aa   :  { %v1646_v34 = vpop.xlane.xlu1 %736  ;;  %v1648_v36 = vpop.xlane.xlu0 %730 }
 0x4ab   :  { %v765_v43 = vsub.f32 %v1598_v40, %v1646_v34  ;;  %1173 = vpow2.f32 %v782_v33  ;;  %v762_v45 = vsub.f32 %v1596_v39, %v1648_v36 }
 0x4ad   :  { %v784_v46 = vmul.f32 1.442695, %v765_v43  ;;  %v778_v50 = vmul.f32 1.442695, %v762_v45 }
 0x4ae   :  { %v1654_v47 = vpop.xlane.xlu1 %744  ;;  %v1656_v48 = vpop.xlane.xlu0 %738 }
 0x4af   :  { %1175 = vpow2.f32 %v784_v46  ;;  %v769_v42 = vsub.f32 %v1604_v11, %v1654_v47  ;;  %v766_v49 = vsub.f32 %v1602_v10, %v1656_v48 }
 0x4b0   :  { %1177 = vpow2.f32 %v790_v44 }
 0x4b1   :  { %v792_v51 = vmul.f32 1.442695, %v769_v42  ;;  %v786_v53 = vmul.f32 1.442695, %v766_v49 }
 0x4b2   :  { %v1662_v52 = vpop.xlane.xlu1 %740  ;;  %v1664_v9 = vpop.xlane.xlu0 %732 }
 0x4b3   :  { %1179 = vpow2.f32 %v792_v51  ;;  %v767_v54 = vsub.f32 %v1608_v15, %v1662_v52  ;;  %v763_v55 = vsub.f32 %v1610_v16, %v1664_v9 }
 0x4b4   :  { %1181 = vpow2.f32 %v778_v50 }
 0x4b5   :  { %v780_v56 = vmul.f32 1.442695, %v763_v55  ;;  %v1174_v57 = vpop.eup %1173  ;;  %1183 = vpow2.f32 %v786_v53  ;;  %v788_v60 = vmul.f32 1.442695, %v767_v54 }
 0x4b6   :  { %v1670_v58 = vpop.xlane.xlu1 %752  ;;  %v1672_v59 = vpop.xlane.xlu0 %750  ;;  %814 = vadd.xlane.f32.xlu0 %v1174_v57 }
 0x4b7   :  { %v773_v61 = vsub.f32 %v1616_v18, %v1670_v58  ;;  %v772_v62 = vsub.f32 %v1612_v17, %v1672_v59  ;;  %1185 = vpow2.f32 %v780_v56 }
 0x4b8   :  { %1187 = vpow2.f32 %v788_v60 }
 0x4b9   :  { %v1176_v63 = vpop.eup %1175  ;;  %v798_v0 = vmul.f32 1.442695, %v772_v62  ;;  %v800_v6 = vmul.f32 1.442695, %v773_v61 }
 0x4ba   :  { %v1178_v1 = vpop.eup %1177  ;;  %816 = vadd.xlane.f32.xlu1 %v1176_v63  ;;  %v1678_v2 = vpop.xlane.xlu1 %748 }
 0x4bb   :  { %v1680_v3 = vpop.xlane.xlu0 %746  ;;  %v771_v7 = vsub.f32 %v1622_v24, %v1678_v2  ;;  %822 = vadd.xlane.f32.xlu0 %v1178_v1  ;;  %1189 = vpow2.f32 %v798_v0 }
 0x4bc   :  { %v770_v35 = vsub.f32 %v1620_v23, %v1680_v3  ;;  %1191 = vpow2.f32 %v800_v6 }
 0x4bd   :  { %v1180_v8 = vpop.eup %1179  ;;  %v796_v13 = vmul.f32 1.442695, %v771_v7 }
 0x4be   :  { %v794_v37 = vmul.f32 1.442695, %v770_v35  ;;  %v1182_v38 = vpop.eup %1181  ;;  %824 = vadd.xlane.f32.xlu1 %v1180_v8  ;;  %v1686_v41 = vpop.xlane.xlu1 %756 }
 0x4bf   :  { %v1688_v12 = vpop.xlane.xlu0 %754  ;;  %v775_v14 = vsub.f32 %v1628_v26, %v1686_v41  ;;  %810 = vadd.xlane.f32.xlu0 %v1182_v38  ;;  %v1184_v20 = vpop.eup %1183 }
 0x4c0   :  { %v774_v19 = vsub.f32 %v1624_v25, %v1688_v12  ;;  %1193 = vpow2.f32 %v794_v37 }
 0x4c1   :  { %v1186_v22 = vpop.eup %1185  ;;  %1195 = vpow2.f32 %v796_v13  ;;  %v804_v33 = vmul.f32 1.442695, %v775_v14 }
 0x4c2   :  { %v802_v21 = vmul.f32 1.442695, %v774_v19  ;;  %v1694_v31 = vpop.xlane.xlu1 %760  ;;  %812 = vadd.xlane.f32.xlu1 %v1186_v22  ;;  %v1188_v45 = vpop.eup %1187 }
 0x4c3   :  { %v1696_v32 = vpop.xlane.xlu0 %758  ;;  %818 = vadd.xlane.f32.xlu0 %v1184_v20  ;;  %v777_v44 = vsub.f32 %v1634_v28, %v1694_v31 }
 0x4c4   :  { %v776_v43 = vsub.f32 %v1632_v27, %v1696_v32  ;;  %1197 = vpow2.f32 %v802_v21 }
 0x4c5   :  { %v1190_v42 = vpop.eup %1189  ;;  %1199 = vpow2.f32 %v804_v33  ;;  %v808_v49 = vmul.f32 1.442695, %v777_v44 }
 0x4c6   :  { %v806_v46 = vmul.f32 1.442695, %v776_v43  ;;  %820 = vadd.xlane.f32.xlu1 %v1188_v45  ;;  %v1192_v50 = vpop.eup %1191 }
 0x4c7   :  { %830 = vadd.xlane.f32.xlu0 %v1190_v42 }
 0x4c8   :  { %1201 = vpow2.f32 %v806_v46 }
 0x4c9   :  { %1203 = vpow2.f32 %v808_v49 }
 0x4ca   :  { %v1194_v51 = vpop.eup %1193  ;;  %832 = vadd.xlane.f32.xlu1 %v1192_v50 }
 0x4cb   :  { %826 = vadd.xlane.f32.xlu0 %v1194_v51  ;;  %v1196_v53 = vpop.eup %1195 }
 0x4ce   :  { %v1198_v54 = vpop.eup %1197  ;;  %828 = vadd.xlane.f32.xlu1 %v1196_v53 }
 0x4cf   :  { %834 = vadd.xlane.f32.xlu0 %v1198_v54  ;;  %v1200_v55 = vpop.eup %1199 }
 0x4d2   :  { %v1202_v56 = vpop.eup %1201  ;;  %836 = vadd.xlane.f32.xlu1 %v1200_v55 }
 0x4d3   :  { %838 = vadd.xlane.f32.xlu0 %v1202_v56  ;;  %v1204_v57 = vpop.eup %1203 }
 0x4d6   :  { %840 = vadd.xlane.f32.xlu1 %v1204_v57 }
 0x543   :  { %v815_v60 = vpop.xlane.xlu0 %814 }
 0x544   :  { %1205 = vlog2.f32 %v815_v60 }
 0x547   :  { %v817_v61 = vpop.xlane.xlu1 %816 }
 0x548   :  { %1207 = vlog2.f32 %v817_v61  ;;  %v823_v62 = vpop.xlane.xlu0 %822 }
 0x549   :  { %1209 = vlog2.f32 %v823_v62 }
 0x54b   :  { %v825_v63 = vpop.xlane.xlu1 %824 }
 0x54c   :  { %1211 = vlog2.f32 %v825_v63  ;;  %v811_v0 = vpop.xlane.xlu0 %810 }
 0x54d   :  { %1213 = vlog2.f32 %v811_v0 }
 0x54e   :  { %v1206_v1 = vpop.eup %1205 }
 0x54f   :  { %v847_v6 = vmul.f32 0.6931472, %v1206_v1  ;;  %v813_v7 = vpop.xlane.xlu1 %812 }
 0x550   :  { %v819_v35 = vpop.xlane.xlu0 %818  ;;  %1215 = vlog2.f32 %v813_v7 }
 0x551   :  { %v876_v37 = vadd.f32 %v847_v6, %v1640_v30  ;;  %1217 = vlog2.f32 %v819_v35 }
 0x552   :  { %v1208_v8 = vpop.eup %1207 }
 0x553   :  { %v1210_v38 = vpop.eup %1209  ;;  %v849_v13 = vmul.f32 0.6931472, %v1208_v8  ;;  %v892_v14 = vsub.f32 %v1590_v4, %v876_v37  ;;  %v821_v20 = vpop.xlane.xlu1 %820 }
 0x554   :  { %v855_v19 = vmul.f32 0.6931472, %v1210_v38  ;;  %v831_v21 = vpop.xlane.xlu0 %830  ;;  %1219 = vlog2.f32 %v821_v20 }
 0x555   :  { %v877_v22 = vadd.f32 %v849_v13, %v1646_v34  ;;  %908 = vst [vmem:[#allocation13 + $0x10] sm:$0xff] %v892_v14  ;;  %1221 = vlog2.f32 %v831_v21 }
 0x556   :  { %v1212_v33 = vpop.eup %1211  ;;  %v880_v43 = vadd.f32 %v855_v19, %v1638_v29 }
 0x557   :  { %v1214_v44 = vpop.eup %1213  ;;  %v893_v45 = vsub.f32 %v1598_v40, %v877_v22  ;;  %v857_v30 = vmul.f32 0.6931472, %v1212_v33  ;;  %v833_v49 = vpop.xlane.xlu1 %832 }
 0x558   :  { %v896_v46 = vsub.f32 %v1592_v5, %v880_v43  ;;  %v843_v42 = vmul.f32 0.6931472, %v1214_v44  ;;  %v827_v4 = vpop.xlane.xlu0 %826  ;;  %1223 = vlog2.f32 %v833_v49 }
 0x559   :  { %909 = vst [vmem:[#allocation13 + $0x18] sm:$0xff] %v893_v45  ;;  %v881_v50 = vadd.f32 %v857_v30, %v1654_v47  ;;  %1225 = vlog2.f32 %v827_v4 }
 0x55a   :  { %912 = vst [vmem:[#allocation13 + $0x30] sm:$0xff] %v896_v46  ;;  %v874_v34 = vadd.f32 %v843_v42, %v1648_v36  ;;  %v1216_v51 = vpop.eup %1215 }
 0x55b   :  { %v897_v29 = vsub.f32 %v1604_v11, %v881_v50  ;;  %v1218_v53 = vpop.eup %1217  ;;  %v845_v54 = vmul.f32 0.6931472, %v1216_v51  ;;  %v829_v55 = vpop.xlane.xlu1 %828 }
 0x55c   :  { %v890_v40 = vsub.f32 %v1596_v39, %v874_v34  ;;  %v835_v5 = vpop.xlane.xlu0 %834  ;;  %v851_v56 = vmul.f32 0.6931472, %v1218_v53  ;;  %1227 = vlog2.f32 %v829_v55 }
 0x55d   :  { %913 = vst [vmem:[#allocation13 + $0x38] sm:$0xff] %v897_v29  ;;  %v875_v47 = vadd.f32 %v845_v54, %v1664_v9  ;;  %1229 = vlog2.f32 %v835_v5 }
 0x55e   :  { %906 = vst [vmem:[#allocation13] sm:$0xff] %v890_v40  ;;  %v1220_v57 = vpop.eup %1219  ;;  %v878_v36 = vadd.f32 %v851_v56, %v1656_v48 }
 0x55f   :  { %v1222_v60 = vpop.eup %1221  ;;  %v891_v61 = vsub.f32 %v1610_v16, %v875_v47  ;;  %v853_v11 = vmul.f32 0.6931472, %v1220_v57  ;;  %v837_v62 = vpop.xlane.xlu1 %836 }
 0x560   :  { %v839_v63 = vpop.xlane.xlu0 %838  ;;  %v894_v39 = vsub.f32 %v1602_v10, %v878_v36  ;;  %v863_v0 = vmul.f32 0.6931472, %v1222_v60  ;;  %1231 = vlog2.f32 %v837_v62 }
 0x561   :  { %907 = vst [vmem:[#allocation13 + $0x8] sm:$0xff] %v891_v61  ;;  %v879_v1 = vadd.f32 %v853_v11, %v1662_v52  ;;  %1233 = vlog2.f32 %v839_v63 }
 0x562   :  { %v1224_v6 = vpop.eup %1223  ;;  %910 = vst [vmem:[#allocation13 + $0x20] sm:$0xff] %v894_v39  ;;  %v884_v9 = vadd.f32 %v863_v0, %v1672_v59 }
 0x563   :  { %v1226_v7 = vpop.eup %1225  ;;  %v895_v48 = vsub.f32 %v1608_v15, %v879_v1  ;;  %v865_v35 = vmul.f32 0.6931472, %v1224_v6  ;;  %v841_v16 = vpop.xlane.xlu1 %840 }
 0x564   :  { %v900_v8 = vsub.f32 %v1612_v17, %v884_v9  ;;  %v859_v37 = vmul.f32 0.6931472, %v1226_v7  ;;  %1235 = vlog2.f32 %v841_v16 }
 0x565   :  { %911 = vst [vmem:[#allocation13 + $0x28] sm:$0xff] %v895_v48  ;;  %v885_v10 = vadd.f32 %v865_v35, %v1670_v58 }
 0x566   :  { %v1228_v38 = vpop.eup %1227  ;;  %916 = vst [vmem:[#allocation13 + $0x50] sm:$0xff] %v900_v8  ;;  %v882_v52 = vadd.f32 %v859_v37, %v1680_v3 }
 0x567   :  { %v1230_v13 = vpop.eup %1229  ;;  %v901_v14 = vsub.f32 %v1616_v18, %v885_v10  ;;  %v861_v59 = vmul.f32 0.6931472, %v1228_v38 }
 0x568   :  { %v898_v19 = vsub.f32 %v1620_v23, %v882_v52  ;;  %v867_v15 = vmul.f32 0.6931472, %v1230_v13 }
 0x569   :  { %917 = vst [vmem:[#allocation13 + $0x58] sm:$0xff] %v901_v14  ;;  %v883_v20 = vadd.f32 %v861_v59, %v1678_v2 }
 0x56a   :  { %v1232_v17 = vpop.eup %1231  ;;  %914 = vst [vmem:[#allocation13 + $0x40] sm:$0xff] %v898_v19  ;;  %v886_v21 = vadd.f32 %v867_v15, %v1688_v12 }
 0x56b   :  { %v1234_v22 = vpop.eup %1233  ;;  %v899_v58 = vsub.f32 %v1622_v24, %v883_v20  ;;  %v869_v33 = vmul.f32 0.6931472, %v1232_v17 }
 0x56c   :  { %v902_v3 = vsub.f32 %v1624_v25, %v886_v21  ;;  %v871_v43 = vmul.f32 0.6931472, %v1234_v22 }
 0x56d   :  { %915 = vst [vmem:[#allocation13 + $0x48] sm:$0xff] %v899_v58  ;;  %v887_v18 = vadd.f32 %v869_v33, %v1686_v41 }
 0x56e   :  { %v1236_v44 = vpop.eup %1235  ;;  %918 = vst [vmem:[#allocation13 + $0x60] sm:$0xff] %v902_v3  ;;  %v888_v23 = vadd.f32 %v871_v43, %v1696_v32 }
 0x56f   :  { %v903_v2 = vsub.f32 %v1628_v26, %v887_v18  ;;  %v873_v45 = vmul.f32 0.6931472, %v1236_v44 }
 0x570   :  { %v904_v30 = vsub.f32 %v1632_v27, %v888_v23 }
 0x571   :  { %919 = vst [vmem:[#allocation13 + $0x68] sm:$0xff] %v903_v2  ;;  %v889_v24 = vadd.f32 %v873_v45, %v1694_v31 }
 0x572   :  { %920 = vst [vmem:[#allocation13 + $0x70] sm:$0xff] %v904_v30 }
 0x573   :  { %v905_v25 = vsub.f32 %v1634_v28, %v889_v24 }
 0x575   :  { %921 = vst [vmem:[#allocation13 + $0x78] sm:$0xff] %v905_v25 }
 0x576   :  { %1380 = shalt.err (!%p1377_p10)
}
 0x577   :  { %s1381_s22 = scalar_lea.hbm %s1752_s6, 2048 }
 0x578   :  { %p1382_p11 = scmp.ne.s32.totalorder %s1752_s6, %s1381_s22  ;;  %p1385_p12 = scmp.lt.u32.totalorder %s1381_s22, %s1752_s6 }
 0x57a   :  { %p1387_p13 = pnand %p1385_p12, %p1382_p11 }
 0x57c   :  { %1390 = shalt.err (!%p1387_p13)
}
 0x57d   :  { %s1410_s29 = smov 128   ;;  %s1411_s30 = smov 8  }
 0x57e   :  { %933 = dma.vmem_to_hbm [thread:$0]  %s928_s10, 2048, %s1752_s6, [#allocation4], %s1410_s29, %s1410_s29, %s1411_s30  }
 0x57f   :  { %1399 = dma.done.wait [#allocation4], 2048  }
 0x580   :  { %1400 = vsyncadd [#allocation4], 4294965248 }
 0x581   :  { %937 = vsyncpa [#allocation3], 1 }
 0x582   :  { %938 = vsyncpa [#allocation6], 1 }
 0x583   :  { %939 = vsyncpa [#allocation9], 1 }
 0x584   :  { %940 = vsyncpa [#allocation12], 1 }
 0x585   :  { %941 = vsyncpa [#allocation4], 1 }

</bundles_post_ra>
